<compile_context>
chip_gen: v7x
topology: tpu7x:2x2x1
jax: 0.10.0
libtpu: 0.0.40
codegen_flags: <defaults>
</compile_context>

<pallas_src>
import functools

import jax
import jax.numpy as jnp
from jax import lax
from jax.experimental import pallas as pl
from jax.experimental.pallas import tpu as pltpu

LANE_PAD = 128  # lane-dense padding for both kernel outputs


# ----------------------------------------------------------------------------
# Fused Pallas kernel: pooler + GAT(last row) + gate residual + normalize + dense
# ----------------------------------------------------------------------------
def _fused_forward_kernel(cls_ref, cent_dst_ref, mask_last_ref, cent_h_blk_ref,
                          expand_last_ref, pooler_w_ref, pooler_b_ref,
                          w_flat_ref, w_src_ref, w_dst_ref, b_flat_ref,
                          gate_w_ref, gate_b_ref,
                          dense_wa_ref, dense_wb_ref, dense_b_ref,
                          logits_ref, w_ref):
    f32 = jnp.float32
    bf16 = jnp.bfloat16

    BB = cls_ref.shape[0]
    N, H = cent_dst_ref.shape        # N = K + 1 graph nodes, H attention heads
    HD = w_flat_ref.shape[1]         # H * Dout (== bert_dim for this module)
    LP = w_ref.shape[1]              # lane-dense padding of the weight-row output

    # ---- BERT pooler: tanh(cls @ W + b); dropout = identity (eval) --------------
    pooled = jnp.tanh(
        jnp.dot(cls_ref[...], pooler_w_ref[...], preferred_element_type=f32)
        + pooler_b_ref[...])                                                # (BB, D) f32
    pooled_bf = pooled.astype(bf16)

    # ---- project ONLY the pooled node (centroid projections are precomputed) ----
    h_pool = jnp.dot(pooled_bf, w_flat_ref[...], preferred_element_type=f32)  # (BB, HD)
    t_pool = jnp.tanh(h_pool).astype(bf16)
    src_pool = jnp.dot(t_pool, w_src_ref[...], preferred_element_type=f32)    # (BB, H)
    dst_pool = jnp.dot(t_pool, w_dst_ref[...], preferred_element_type=f32)    # (BB, H)

    # ---- attention logits for the LAST row only (star adjacency: row is all ones)
    # dst scores: centroids (precomputed, last row zero) + pooled node's own dst score.
    dst_all = (cent_dst_ref[...][None, :, :]
               + mask_last_ref[...][None, :, :] * dst_pool[:, None, :])       # (BB, N, H)
    logit = src_pool[:, None, :] + dst_all
    logit = jnp.where(logit > 0, logit, 0.2 * logit)                          # leaky_relu(0.2)

    m = jnp.max(logit, axis=1, keepdims=True)
    e = jnp.exp(logit - m)
    attn = e / jnp.sum(e, axis=1, keepdims=True)                              # exact softmax

    # ---- weight row (head-averaged attention), F.normalize(dim=2), lane-dense ---
    # NOTE: (BB, N, H) with H=4 is lane-sparse, but this region is O(BB*N*H) and tiny.
    w_row = jnp.mean(attn, axis=-1)                                           # (BB, N)
    inv = lax.rsqrt(jnp.maximum(jnp.sum(w_row * w_row, axis=-1, keepdims=True), 1e-24))
    w_norm = w_row * inv
    w_ref[...] = jnp.concatenate(
        [w_norm, jnp.zeros((BB, LP - N), f32)], axis=-1).astype(w_ref.dtype)

    # ---- aggregate the last node: two lane-dense MXU matmuls --------------------
    #   agg_cent[b, h*Dout+o] = sum_{n<K} attn[b,n,h] * cent_h[n,h,o]
    #   a_last  [b, h*Dout+o] = attn[b, K, h]   (head -> lane expansion)
    attn_bf = attn.reshape(BB, N * H).astype(bf16)
    agg_cent = jnp.dot(attn_bf, cent_h_blk_ref[...], preferred_element_type=f32)   # (BB, HD)
    a_last = jnp.dot(attn_bf, expand_last_ref[...], preferred_element_type=f32)    # (BB, HD)
    agg = agg_cent + a_last * h_pool + b_flat_ref[...]

    # ---- ELU + sigmoid-gate residual (last node's input feature == pooled) ------
    elu = jnp.where(agg > 0, agg, jnp.exp(jnp.minimum(agg, 0.0)) - 1.0)
    gate = jax.nn.sigmoid(
        jnp.dot(pooled_bf, gate_w_ref[...], preferred_element_type=f32)
        + gate_b_ref[...])                                                    # (BB, D)
    node_last = gate * elu + (1.0 - gate) * pooled                            # (BB, D)

    # ---- dense head on [pooled ; last node]: split weights, lane-dense output ---
    out = (jnp.dot(pooled_bf, dense_wa_ref[...], preferred_element_type=f32)
           + jnp.dot(node_last.astype(bf16), dense_wb_ref[...], preferred_element_type=f32)
           + dense_b_ref[...])
    logits_ref[...] = out.astype(logits_ref.dtype)


def _choose_bb(B):
    """Biggest batch tile <= 256 that divides B; prefer >= 2 grid steps (v7x megacore)."""
    cands = [c for c in (256, 128, 64, 32, 16, 8) if B % c == 0]
    for c in cands:
        if B // c >= 2:
            return c
    return cands[0] if cands else B


def _fused_call(cls, cent_dst_pad, mask_last, cent_h_blk, expand_last, kp):
    B, D = cls.shape
    out_pad = kp['dense_w_a'].shape[1]
    BB = _choose_bb(B)
    grid = (pl.cdiv(B, BB),)

    def const(a):
        # Constant block index across the whole grid -> single-buffer it (VMEM headroom).
        nd = a.ndim
        return pl.BlockSpec(a.shape, lambda i, _nd=nd: (0,) * _nd,
                            pipeline_mode=pl.Buffered(1))

    consts = (cent_dst_pad, mask_last, cent_h_blk, expand_last,
              kp['pooler_w'], kp['pooler_b'], kp['w_flat'],
              kp['w_src_blk'], kp['w_dst_blk'], kp['b_flat'],
              kp['gate_w'], kp['gate_b'],
              kp['dense_w_a'], kp['dense_w_b'], kp['dense_b'])

    in_specs = [pl.BlockSpec((BB, D), lambda i: (i, 0))] + [const(a) for a in consts]
    out_specs = (pl.BlockSpec((BB, out_pad), lambda i: (i, 0)),
                 pl.BlockSpec((BB, out_pad), lambda i: (i, 0)))
    out_shape = (jax.ShapeDtypeStruct((B, out_pad), jnp.float32),
                 jax.ShapeDtypeStruct((B, out_pad), jnp.float32))

    return pl.pallas_call(
        _fused_forward_kernel,
        grid=grid,
        in_specs=in_specs,
        out_specs=out_specs,
        out_shape=out_shape,
        compiler_params=pltpu.CompilerParams(
            dimension_semantics=("parallel",),
            vmem_limit_bytes=32 * 1024 * 1024),
    )(cls, *consts)


# ----------------------------------------------------------------------------
# Model forward (embedding/LayerNorm glue + batch-invariant centroid precompute
# in XLA; everything batch-dependent fused in one Pallas kernel)
# ----------------------------------------------------------------------------
def bert_scl_proto_graph_forward(kp, concat_bert_indices,
                                 concat_segments_indices, centroids,
                                 *, num_labels):
    bf16 = jnp.bfloat16
    H, D, Dout = kp['gat_W'].shape
    HD = H * Dout
    cent = centroids[0]                                  # centroids = centroids[0] -> (K, D)
    K = cent.shape[0]
    N = K + 1
    assert N <= LANE_PAD and num_labels <= LANE_PAD

    # ---- synthetic BERT: only the [CLS] position is consumed downstream ---------
    cls_ids = concat_bert_indices[:, 0]
    cls_seg = concat_segments_indices[:, 0]
    emb = kp['word_emb'][cls_ids] + kp['seg_emb'][cls_seg] + kp['pos_emb'][0]
    mu = jnp.mean(emb, axis=-1, keepdims=True)
    var = jnp.mean((emb - mu) ** 2, axis=-1, keepdims=True)
    cls = (emb - mu) * lax.rsqrt(var + 1e-12) * kp['ln_gamma'] + kp['ln_beta']
    cls = cls.astype(bf16)                               # stream the only per-batch operand as bf16

    # ---- batch-invariant centroid precompute (hoisted out of the Pallas grid) ---
    cent_h = jnp.einsum('kd,hdo->kho', cent, kp['gat_W'])                    # (K, H, Dout)
    cent_dst = jnp.einsum('kho,ho->kh', jnp.tanh(cent_h), kp['gat_w_dst'])   # (K, H)
    cent_dst_pad = jnp.concatenate([cent_dst, jnp.zeros((1, H), jnp.float32)], axis=0)  # (N, H)
    mask_last = jnp.zeros((N, 1), jnp.float32).at[K, 0].set(1.0)             # one-hot last node

    eye = jnp.eye(H, dtype=jnp.float32)
    # block matrix: row (n*H + h) carries cent_h[n, h, :] in lane block h, zeros elsewhere;
    # the H rows for the last node are zero (the pooled node is handled in-kernel).
    blk = (cent_h[:, :, None, :] * eye[None, :, :, None]).reshape(K * H, HD)
    cent_h_blk = jnp.concatenate([blk, jnp.zeros((H, HD), jnp.float32)], axis=0).astype(bf16)
    # head -> lane expansion selecting ONLY the last node's attention values.
    expand_last = jnp.concatenate(
        [jnp.zeros((K * H, HD), jnp.float32), jnp.repeat(eye, Dout, axis=1)], axis=0).astype(bf16)

    logits_pad, w_pad = _fused_call(cls, cent_dst_pad, mask_last, cent_h_blk, expand_last, kp)
    logits = logits_pad[:, :num_labels]                  # un-pad the lane-dense outputs
    node_for_con = w_pad[:, :N][:, None, :]              # (B, 1, N), already L2-normalized
    return logits, node_for_con


# ----------------------------------------------------------------------------
# Parameters: module-style init + one-time fusion/packing for the kernel
# ----------------------------------------------------------------------------
def init_params(key, vocab, seq, bert_dim, att_head, gnn_out, num_labels):
    ks = jax.random.split(key, 10)

    def rnd(k, shape, s=0.05):
        return jax.random.normal(k, shape, jnp.float32) * s

    return {
        # synthetic BERT
        'word_emb': rnd(ks[0], (vocab, bert_dim)),
        'seg_emb': rnd(ks[1], (2, bert_dim)),
        'pos_emb': rnd(ks[2], (seq, bert_dim)),
        'ln_gamma': jnp.ones((bert_dim,), jnp.float32),
        'ln_beta': jnp.zeros((bert_dim,), jnp.float32),
        'pooler_w_t': rnd(ks[3], (bert_dim, bert_dim)),
        'pooler_b': jnp.zeros((1, bert_dim), jnp.float32),
        # GraphAttentionLayer_weight (in_dim == att_head * out_dim == bert_dim)
        'gat_W': rnd(ks[4], (att_head, bert_dim, gnn_out), 0.1),
        'gat_b': jnp.zeros((att_head, gnn_out), jnp.float32),
        'gat_w_src': rnd(ks[5], (att_head, gnn_out), 0.3),
        'gat_w_dst': rnd(ks[6], (att_head, gnn_out), 0.3),
        'gat_H_w_t': rnd(ks[7], (bert_dim, bert_dim), 0.1),   # H: Linear(in, in), pre-transposed
        'gat_H_b': jnp.zeros((1, bert_dim), jnp.float32),
        # dense: Linear(2*bert_dim, num_labels), pre-transposed
        'dense_w_t': rnd(ks[8], (2 * bert_dim, num_labels), 0.1),
        'dense_b': jnp.zeros((1, num_labels), jnp.float32),
    }


def prepare_kernel_params(p, *, out_pad=LANE_PAD):
    """One-time (outside jit) packing of module params into fused kernel operands."""
    bf16 = jnp.bfloat16
    H, D, Dout = p['gat_W'].shape
    HD = H * Dout
    assert HD == D, "att_head * gnn_out must equal bert_dim for the residual"
    num_labels = p['dense_w_t'].shape[1]
    assert num_labels <= out_pad
    eye = jnp.eye(H, dtype=jnp.float32)

    dense_w = jnp.zeros((2 * D, out_pad), jnp.float32).at[:, :num_labels].set(p['dense_w_t'])
    dense_b = jnp.zeros((1, out_pad), jnp.float32).at[:, :num_labels].set(p['dense_b'])

    return {
        # pass-through pieces used by the XLA wrapper (embeddings + centroid precompute)
        'word_emb': p['word_emb'], 'seg_emb': p['seg_emb'], 'pos_emb': p['pos_emb'],
        'ln_gamma': p['ln_gamma'], 'ln_beta': p['ln_beta'],
        'gat_W': p['gat_W'], 'gat_w_dst': p['gat_w_dst'],
        # fused kernel operands
        'pooler_w': p['pooler_w_t'].astype(bf16),
        'pooler_b': p['pooler_b'],
        # all heads fused on the lane axis: (D, H*Dout)
        'w_flat': jnp.transpose(p['gat_W'], (1, 0, 2)).reshape(D, HD).astype(bf16),
        # block-structured score matrices: col h holds w_src/w_dst[h] in rows h*Dout:(h+1)*Dout
        'w_src_blk': (p['gat_w_src'][:, :, None] * eye[:, None, :]).reshape(HD, H).astype(bf16),
        'w_dst_blk': (p['gat_w_dst'][:, :, None] * eye[:, None, :]).reshape(HD, H).astype(bf16),
        'b_flat': p['gat_b'].reshape(1, HD),
        'gate_w': p['gat_H_w_t'].astype(bf16),
        'gate_b': p['gat_H_b'],
        # dense head split (pooled / node halves) -> no lane concatenate in-kernel
        'dense_w_a': dense_w[:D].astype(bf16),
        'dense_w_b': dense_w[D:].astype(bf16),
        'dense_b': dense_b,
    }


if __name__ == "__main__":
    # small shapes consistent with the module:
    # att_heads="4", gnn_dims="8" (4*8 == bert_dim == 32), num_labels=3
    B, S, VOCAB, D = 2, 8, 50, 32
    ATT_HEAD, GNN_OUT = 4, 8
    NUM_LABELS, K = 3, 7

    key = jax.random.PRNGKey(0)
    k_ids, k_seg, k_cent, k_par = jax.random.split(key, 4)
    concat_bert_indices = jax.random.randint(k_ids, (B, S), 0, VOCAB, dtype=jnp.int32)
    concat_segments_indices = jax.random.randint(k_seg, (B, S), 0, 2, dtype=jnp.int32)
    centroids = jax.random.normal(k_cent, (1, K, D), jnp.float32)

    params = init_params(k_par, VOCAB, S, D, ATT_HEAD, GNN_OUT, NUM_LABELS)
    kparams = prepare_kernel_params(params)     # one-time packing, outside jit

    fwd = jax.jit(functools.partial(bert_scl_proto_graph_forward, kparams,
                                    num_labels=NUM_LABELS))
    logits, node_for_con = fwd(concat_bert_indices, concat_segments_indices, centroids)
    jax.block_until_ready((logits, node_for_con))

    assert logits.shape == (B, NUM_LABELS)
    assert node_for_con.shape == (B, 1, K + 1)
    assert bool(jnp.all(jnp.isfinite(logits))) and bool(jnp.all(jnp.isfinite(node_for_con)))
    print("KERNEL_OK")
</pallas_src>

<mosaic_0001>
module attributes {stable_mosaic.version = 11 : i64} {
  func.func @_fused_forward_kernel(%arg0: i32, %arg1: memref<2x32xbf16, #tpu.memory_space<vmem>>, %arg2: memref<8x4xf32, #tpu.memory_space<vmem>>, %arg3: memref<8x1xf32, #tpu.memory_space<vmem>>, %arg4: memref<32x32xbf16, #tpu.memory_space<vmem>>, %arg5: memref<32x32xbf16, #tpu.memory_space<vmem>>, %arg6: memref<32x32xbf16, #tpu.memory_space<vmem>>, %arg7: memref<1x32xf32, #tpu.memory_space<vmem>>, %arg8: memref<32x32xbf16, #tpu.memory_space<vmem>>, %arg9: memref<32x4xbf16, #tpu.memory_space<vmem>>, %arg10: memref<32x4xbf16, #tpu.memory_space<vmem>>, %arg11: memref<1x32xf32, #tpu.memory_space<vmem>>, %arg12: memref<32x32xbf16, #tpu.memory_space<vmem>>, %arg13: memref<1x32xf32, #tpu.memory_space<vmem>>, %arg14: memref<32x128xbf16, #tpu.memory_space<vmem>>, %arg15: memref<32x128xbf16, #tpu.memory_space<vmem>>, %arg16: memref<1x128xf32, #tpu.memory_space<vmem>>, %arg17: memref<2x128xf32, #tpu.memory_space<vmem>>, %arg18: memref<2x128xf32, #tpu.memory_space<vmem>>) attributes {dimension_semantics = [#tpu.dimension_semantics<parallel>], iteration_bounds = array<i64: 1>, scalar_prefetch = 0 : i64, scratch_operands = 0 : i64, tpu.core_type = #tpu.core_type<tc>, window_params = [{transform_indices = @transform_0, window_bounds = array<i64: 2, 32>}, {pipeline_mode = #tpu.pipeline_mode<synchronous>, transform_indices = @transform_1, window_bounds = array<i64: 8, 4>}, {pipeline_mode = #tpu.pipeline_mode<synchronous>, transform_indices = @transform_2, window_bounds = array<i64: 8, 1>}, {pipeline_mode = #tpu.pipeline_mode<synchronous>, transform_indices = @transform_3, window_bounds = array<i64: 32, 32>}, {pipeline_mode = #tpu.pipeline_mode<synchronous>, transform_indices = @transform_4, window_bounds = array<i64: 32, 32>}, {pipeline_mode = #tpu.pipeline_mode<synchronous>, transform_indices = @transform_5, window_bounds = array<i64: 32, 32>}, {pipeline_mode = #tpu.pipeline_mode<synchronous>, transform_indices = @transform_6, window_bounds = array<i64: 1, 32>}, {pipeline_mode = #tpu.pipeline_mode<synchronous>, transform_indices = @transform_7, window_bounds = array<i64: 32, 32>}, {pipeline_mode = #tpu.pipeline_mode<synchronous>, transform_indices = @transform_8, window_bounds = array<i64: 32, 4>}, {pipeline_mode = #tpu.pipeline_mode<synchronous>, transform_indices = @transform_9, window_bounds = array<i64: 32, 4>}, {pipeline_mode = #tpu.pipeline_mode<synchronous>, transform_indices = @transform_10, window_bounds = array<i64: 1, 32>}, {pipeline_mode = #tpu.pipeline_mode<synchronous>, transform_indices = @transform_11, window_bounds = array<i64: 32, 32>}, {pipeline_mode = #tpu.pipeline_mode<synchronous>, transform_indices = @transform_12, window_bounds = array<i64: 1, 32>}, {pipeline_mode = #tpu.pipeline_mode<synchronous>, transform_indices = @transform_13, window_bounds = array<i64: 32, 128>}, {pipeline_mode = #tpu.pipeline_mode<synchronous>, transform_indices = @transform_14, window_bounds = array<i64: 32, 128>}, {pipeline_mode = #tpu.pipeline_mode<synchronous>, transform_indices = @transform_15, window_bounds = array<i64: 1, 128>}, {transform_indices = @transform_16, window_bounds = array<i64: 2, 128>}, {transform_indices = @transform_17, window_bounds = array<i64: 2, 128>}]} {
    %c0 = arith.constant 0 : index
    %c0_0 = arith.constant 0 : index
    %0 = vector.load %arg1[%c0, %c0_0] : memref<2x32xbf16, #tpu.memory_space<vmem>>, vector<2x32xbf16>
    %c0_1 = arith.constant 0 : index
    %c0_2 = arith.constant 0 : index
    %1 = vector.load %arg6[%c0_1, %c0_2] : memref<32x32xbf16, #tpu.memory_space<vmem>>, vector<32x32xbf16>
    %cst = arith.constant dense<0.000000e+00> : vector<2x32xf32>
    %2 = tpu.matmul %0, %1, %cst {dimension_numbers = #tpu.dot_dimension_numbers<[1], [0], [0], [1], [0, 0, 1, 1], [], []>} : vector<2x32xbf16>, vector<32x32xbf16>, vector<2x32xf32> -> vector<2x32xf32>
    %c0_3 = arith.constant 0 : index
    %c0_4 = arith.constant 0 : index
    %3 = vector.load %arg7[%c0_3, %c0_4] : memref<1x32xf32, #tpu.memory_space<vmem>>, vector<1x32xf32>
    %4 = vector.broadcast %3 : vector<1x32xf32> to vector<2x32xf32>
    %5 = arith.addf %2, %4 : vector<2x32xf32>
    %6 = math.tanh %5 : vector<2x32xf32>
    %7 = arith.truncf %6 : vector<2x32xf32> to vector<2x32xbf16>
    %c0_5 = arith.constant 0 : index
    %c0_6 = arith.constant 0 : index
    %8 = vector.load %arg8[%c0_5, %c0_6] : memref<32x32xbf16, #tpu.memory_space<vmem>>, vector<32x32xbf16>
    %cst_7 = arith.constant dense<0.000000e+00> : vector<2x32xf32>
    %9 = tpu.matmul %7, %8, %cst_7 {dimension_numbers = #tpu.dot_dimension_numbers<[1], [0], [0], [1], [0, 0, 1, 1], [], []>} : vector<2x32xbf16>, vector<32x32xbf16>, vector<2x32xf32> -> vector<2x32xf32>
    %10 = math.tanh %9 : vector<2x32xf32>
    %11 = arith.truncf %10 : vector<2x32xf32> to vector<2x32xbf16>
    %c0_8 = arith.constant 0 : index
    %c0_9 = arith.constant 0 : index
    %12 = vector.load %arg9[%c0_8, %c0_9] : memref<32x4xbf16, #tpu.memory_space<vmem>>, vector<32x4xbf16>
    %cst_10 = arith.constant dense<0.000000e+00> : vector<2x4xf32>
    %13 = tpu.matmul %11, %12, %cst_10 {dimension_numbers = #tpu.dot_dimension_numbers<[1], [0], [0], [1], [0, 0, 1, 1], [], []>} : vector<2x32xbf16>, vector<32x4xbf16>, vector<2x4xf32> -> vector<2x4xf32>
    %c0_11 = arith.constant 0 : index
    %c0_12 = arith.constant 0 : index
    %14 = vector.load %arg10[%c0_11, %c0_12] : memref<32x4xbf16, #tpu.memory_space<vmem>>, vector<32x4xbf16>
    %cst_13 = arith.constant dense<0.000000e+00> : vector<2x4xf32>
    %15 = tpu.matmul %11, %14, %cst_13 {dimension_numbers = #tpu.dot_dimension_numbers<[1], [0], [0], [1], [0, 0, 1, 1], [], []>} : vector<2x32xbf16>, vector<32x4xbf16>, vector<2x4xf32> -> vector<2x4xf32>
    %c0_14 = arith.constant 0 : index
    %c0_15 = arith.constant 0 : index
    %16 = vector.load %arg2[%c0_14, %c0_15] : memref<8x4xf32, #tpu.memory_space<vmem>>, vector<8x4xf32>
    %17 = vector.shape_cast %16 : vector<8x4xf32> to vector<1x8x4xf32>
    %c0_16 = arith.constant 0 : index
    %c0_17 = arith.constant 0 : index
    %18 = vector.load %arg3[%c0_16, %c0_17] : memref<8x1xf32, #tpu.memory_space<vmem>>, vector<8x1xf32>
    %19 = vector.shape_cast %18 : vector<8x1xf32> to vector<1x8x1xf32>
    %20 = vector.shape_cast %15 : vector<2x4xf32> to vector<2x1x4xf32>
    %21 = vector.broadcast %19 : vector<1x8x1xf32> to vector<2x8x4xf32>
    %22 = vector.broadcast %20 : vector<2x1x4xf32> to vector<2x8x4xf32>
    %23 = arith.mulf %21, %22 : vector<2x8x4xf32>
    %24 = vector.broadcast %17 : vector<1x8x4xf32> to vector<2x8x4xf32>
    %25 = arith.addf %24, %23 : vector<2x8x4xf32>
    %26 = vector.shape_cast %13 : vector<2x4xf32> to vector<2x1x4xf32>
    %27 = vector.broadcast %26 : vector<2x1x4xf32> to vector<2x8x4xf32>
    %28 = arith.addf %27, %25 : vector<2x8x4xf32>
    %cst_18 = arith.constant 0.000000e+00 : f32
    %29 = vector.broadcast %cst_18 : f32 to vector<2x8x4xf32>
    %30 = arith.cmpf ogt, %28, %29 : vector<2x8x4xf32>
    %cst_19 = arith.constant 2.000000e-01 : f32
    %31 = vector.broadcast %cst_19 : f32 to vector<2x8x4xf32>
    %32 = arith.mulf %31, %28 : vector<2x8x4xf32>
    %33 = arith.select %30, %28, %32 : vector<2x8x4xi1>, vector<2x8x4xf32>
    %cst_20 = arith.constant dense<0xFF800000> : vector<2x4xf32>
    %34 = vector.multi_reduction <maximumf>, %33, %cst_20 [1] : vector<2x8x4xf32> to vector<2x4xf32>
    %35 = vector.shape_cast %34 : vector<2x4xf32> to vector<2x1x4xf32>
    %36 = vector.broadcast %35 : vector<2x1x4xf32> to vector<2x8x4xf32>
    %37 = arith.subf %33, %36 : vector<2x8x4xf32>
    %38 = math.exp %37 : vector<2x8x4xf32>
    %cst_21 = arith.constant dense<0.000000e+00> : vector<2x4xf32>
    %39 = vector.multi_reduction <add>, %38, %cst_21 [1] : vector<2x8x4xf32> to vector<2x4xf32>
    %40 = vector.shape_cast %39 : vector<2x4xf32> to vector<2x1x4xf32>
    %41 = vector.broadcast %40 : vector<2x1x4xf32> to vector<2x8x4xf32>
    %42 = arith.divf %38, %41 : vector<2x8x4xf32>
    %cst_22 = arith.constant dense<0.000000e+00> : vector<2x8xf32>
    %43 = vector.multi_reduction <add>, %42, %cst_22 [2] : vector<2x8x4xf32> to vector<2x8xf32>
    %cst_23 = arith.constant 4.000000e+00 : f32
    %44 = vector.broadcast %cst_23 : f32 to vector<2x8xf32>
    %45 = arith.divf %43, %44 : vector<2x8xf32>
    %46 = arith.mulf %45, %45 : vector<2x8xf32>
    %cst_24 = arith.constant dense<0.000000e+00> : vector<2xf32>
    %47 = vector.multi_reduction <add>, %46, %cst_24 [1] : vector<2x8xf32> to vector<2xf32>
    %48 = vector.shape_cast %47 : vector<2xf32> to vector<2x1xf32>
    %cst_25 = arith.constant 1.000000e-24 : f32
    %49 = vector.broadcast %cst_25 : f32 to vector<2x1xf32>
    %50 = arith.maximumf %48, %49 : vector<2x1xf32>
    %51 = math.rsqrt %50 : vector<2x1xf32>
    %52 = vector.broadcast %51 : vector<2x1xf32> to vector<2x8xf32>
    %53 = arith.mulf %45, %52 : vector<2x8xf32>
    %cst_26 = arith.constant 0.000000e+00 : f32
    %54 = vector.broadcast %cst_26 : f32 to vector<2x120xf32>
    %55 = tpu.concatenate %53, %54 in 1 : vector<2x8xf32>, vector<2x120xf32> -> vector<2x128xf32>
    %c0_27 = arith.constant 0 : index
    %c0_28 = arith.constant 0 : index
    %56 = vector.load %arg18[%c0_27, %c0_28] : memref<2x128xf32, #tpu.memory_space<vmem>>, vector<2x128xf32>
    tpu.vector_store %arg18[%c0_27, %c0_28], %55 {strides = array<i32>} : memref<2x128xf32, #tpu.memory_space<vmem>>, vector<2x128xf32>,
    %57 = vector.shape_cast %42 : vector<2x8x4xf32> to vector<2x32xf32>
    %58 = arith.truncf %57 : vector<2x32xf32> to vector<2x32xbf16>
    %c0_29 = arith.constant 0 : index
    %c0_30 = arith.constant 0 : index
    %59 = vector.load %arg4[%c0_29, %c0_30] : memref<32x32xbf16, #tpu.memory_space<vmem>>, vector<32x32xbf16>
    %cst_31 = arith.constant dense<0.000000e+00> : vector<2x32xf32>
    %60 = tpu.matmul %58, %59, %cst_31 {dimension_numbers = #tpu.dot_dimension_numbers<[1], [0], [0], [1], [0, 0, 1, 1], [], []>} : vector<2x32xbf16>, vector<32x32xbf16>, vector<2x32xf32> -> vector<2x32xf32>
    %c0_32 = arith.constant 0 : index
    %c0_33 = arith.constant 0 : index
    %61 = vector.load %arg5[%c0_32, %c0_33] : memref<32x32xbf16, #tpu.memory_space<vmem>>, vector<32x32xbf16>
    %cst_34 = arith.constant dense<0.000000e+00> : vector<2x32xf32>
    %62 = tpu.matmul %58, %61, %cst_34 {dimension_numbers = #tpu.dot_dimension_numbers<[1], [0], [0], [1], [0, 0, 1, 1], [], []>} : vector<2x32xbf16>, vector<32x32xbf16>, vector<2x32xf32> -> vector<2x32xf32>
    %63 = arith.mulf %62, %9 : vector<2x32xf32>
    %64 = arith.addf %60, %63 : vector<2x32xf32>
    %c0_35 = arith.constant 0 : index
    %c0_36 = arith.constant 0 : index
    %65 = vector.load %arg11[%c0_35, %c0_36] : memref<1x32xf32, #tpu.memory_space<vmem>>, vector<1x32xf32>
    %66 = vector.broadcast %65 : vector<1x32xf32> to vector<2x32xf32>
    %67 = arith.addf %64, %66 : vector<2x32xf32>
    %cst_37 = arith.constant 0.000000e+00 : f32
    %68 = vector.broadcast %cst_37 : f32 to vector<2x32xf32>
    %69 = arith.cmpf ogt, %67, %68 : vector<2x32xf32>
    %cst_38 = arith.constant 0.000000e+00 : f32
    %70 = vector.broadcast %cst_38 : f32 to vector<2x32xf32>
    %71 = arith.minimumf %67, %70 : vector<2x32xf32>
    %72 = math.exp %71 : vector<2x32xf32>
    %cst_39 = arith.constant 1.000000e+00 : f32
    %73 = vector.broadcast %cst_39 : f32 to vector<2x32xf32>
    %74 = arith.subf %72, %73 : vector<2x32xf32>
    %75 = arith.select %69, %67, %74 : vector<2x32xi1>, vector<2x32xf32>
    %c0_40 = arith.constant 0 : index
    %c0_41 = arith.constant 0 : index
    %76 = vector.load %arg12[%c0_40, %c0_41] : memref<32x32xbf16, #tpu.memory_space<vmem>>, vector<32x32xbf16>
    %cst_42 = arith.constant dense<0.000000e+00> : vector<2x32xf32>
    %77 = tpu.matmul %7, %76, %cst_42 {dimension_numbers = #tpu.dot_dimension_numbers<[1], [0], [0], [1], [0, 0, 1, 1], [], []>} : vector<2x32xbf16>, vector<32x32xbf16>, vector<2x32xf32> -> vector<2x32xf32>
    %c0_43 = arith.constant 0 : index
    %c0_44 = arith.constant 0 : index
    %78 = vector.load %arg13[%c0_43, %c0_44] : memref<1x32xf32, #tpu.memory_space<vmem>>, vector<1x32xf32>
    %79 = vector.broadcast %78 : vector<1x32xf32> to vector<2x32xf32>
    %80 = arith.addf %77, %79 : vector<2x32xf32>
    %81 = arith.negf %80 : vector<2x32xf32>
    %82 = math.exp %81 : vector<2x32xf32>
    %cst_45 = arith.constant 1.000000e+00 : f32
    %83 = vector.broadcast %cst_45 : f32 to vector<2x32xf32>
    %84 = arith.addf %83, %82 : vector<2x32xf32>
    %85 = arith.divf %83, %84 : vector<2x32xf32>
    %86 = arith.mulf %85, %75 : vector<2x32xf32>
    %cst_46 = arith.constant 1.000000e+00 : f32
    %87 = vector.broadcast %cst_46 : f32 to vector<2x32xf32>
    %88 = arith.subf %87, %85 : vector<2x32xf32>
    %89 = arith.mulf %88, %6 : vector<2x32xf32>
    %90 = arith.addf %86, %89 : vector<2x32xf32>
    %c0_47 = arith.constant 0 : index
    %c0_48 = arith.constant 0 : index
    %91 = vector.load %arg14[%c0_47, %c0_48] : memref<32x128xbf16, #tpu.memory_space<vmem>>, vector<32x128xbf16>
    %cst_49 = arith.constant dense<0.000000e+00> : vector<2x128xf32>
    %92 = tpu.matmul %7, %91, %cst_49 {dimension_numbers = #tpu.dot_dimension_numbers<[1], [0], [0], [1], [0, 0, 1, 1], [], []>} : vector<2x32xbf16>, vector<32x128xbf16>, vector<2x128xf32> -> vector<2x128xf32>
    %93 = arith.truncf %90 : vector<2x32xf32> to vector<2x32xbf16>
    %c0_50 = arith.constant 0 : index
    %c0_51 = arith.constant 0 : index
    %94 = vector.load %arg15[%c0_50, %c0_51] : memref<32x128xbf16, #tpu.memory_space<vmem>>, vector<32x128xbf16>
    %cst_52 = arith.constant dense<0.000000e+00> : vector<2x128xf32>
    %95 = tpu.matmul %93, %94, %cst_52 {dimension_numbers = #tpu.dot_dimension_numbers<[1], [0], [0], [1], [0, 0, 1, 1], [], []>} : vector<2x32xbf16>, vector<32x128xbf16>, vector<2x128xf32> -> vector<2x128xf32>
    %96 = arith.addf %92, %95 : vector<2x128xf32>
    %c0_53 = arith.constant 0 : index
    %c0_54 = arith.constant 0 : index
    %97 = vector.load %arg16[%c0_53, %c0_54] : memref<1x128xf32, #tpu.memory_space<vmem>>, vector<1x128xf32>
    %98 = vector.broadcast %97 : vector<1x128xf32> to vector<2x128xf32>
    %99 = arith.addf %96, %98 : vector<2x128xf32>
    %c0_55 = arith.constant 0 : index
    %c0_56 = arith.constant 0 : index
    %100 = vector.load %arg17[%c0_55, %c0_56] : memref<2x128xf32, #tpu.memory_space<vmem>>, vector<2x128xf32>
    tpu.vector_store %arg17[%c0_55, %c0_56], %99 {strides = array<i32>} : memref<2x128xf32, #tpu.memory_space<vmem>>, vector<2x128xf32>,
    return
  }
  func.func @transform_0(%arg0: i32) -> (i32, i32) {
    %c0_i32 = arith.constant 0 : i32
    %c0_i32_0 = arith.constant 0 : i32
    return %arg0, %c0_i32 : i32, i32
  }
  func.func @transform_1(%arg0: i32) -> (i32, i32) {
    %c0_i32 = arith.constant 0 : i32
    %c0_i32_0 = arith.constant 0 : i32
    %c0_i32_1 = arith.constant 0 : i32
    return %c0_i32, %c0_i32_0 : i32, i32
  }
  func.func @transform_2(%arg0: i32) -> (i32, i32) {
    %c0_i32 = arith.constant 0 : i32
    %c0_i32_0 = arith.constant 0 : i32
    %c0_i32_1 = arith.constant 0 : i32
    return %c0_i32, %c0_i32_0 : i32, i32
  }
  func.func @transform_3(%arg0: i32) -> (i32, i32) {
    %c0_i32 = arith.constant 0 : i32
    %c0_i32_0 = arith.constant 0 : i32
    %c0_i32_1 = arith.constant 0 : i32
    return %c0_i32, %c0_i32_0 : i32, i32
  }
  func.func @transform_4(%arg0: i32) -> (i32, i32) {
    %c0_i32 = arith.constant 0 : i32
    %c0_i32_0 = arith.constant 0 : i32
    %c0_i32_1 = arith.constant 0 : i32
    return %c0_i32, %c0_i32_0 : i32, i32
  }
  func.func @transform_5(%arg0: i32) -> (i32, i32) {
    %c0_i32 = arith.constant 0 : i32
    %c0_i32_0 = arith.constant 0 : i32
    %c0_i32_1 = arith.constant 0 : i32
    return %c0_i32, %c0_i32_0 : i32, i32
  }
  func.func @transform_6(%arg0: i32) -> (i32, i32) {
    %c0_i32 = arith.constant 0 : i32
    %c0_i32_0 = arith.constant 0 : i32
    %c0_i32_1 = arith.constant 0 : i32
    return %c0_i32, %c0_i32_0 : i32, i32
  }
  func.func @transform_7(%arg0: i32) -> (i32, i32) {
    %c0_i32 = arith.constant 0 : i32
    %c0_i32_0 = arith.constant 0 : i32
    %c0_i32_1 = arith.constant 0 : i32
    return %c0_i32, %c0_i32_0 : i32, i32
  }
  func.func @transform_8(%arg0: i32) -> (i32, i32) {
    %c0_i32 = arith.constant 0 : i32
    %c0_i32_0 = arith.constant 0 : i32
    %c0_i32_1 = arith.constant 0 : i32
    return %c0_i32, %c0_i32_0 : i32, i32
  }
  func.func @transform_9(%arg0: i32) -> (i32, i32) {
    %c0_i32 = arith.constant 0 : i32
    %c0_i32_0 = arith.constant 0 : i32
    %c0_i32_1 = arith.constant 0 : i32
    return %c0_i32, %c0_i32_0 : i32, i32
  }
  func.func @transform_10(%arg0: i32) -> (i32, i32) {
    %c0_i32 = arith.constant 0 : i32
    %c0_i32_0 = arith.constant 0 : i32
    %c0_i32_1 = arith.constant 0 : i32
    return %c0_i32, %c0_i32_0 : i32, i32
  }
  func.func @transform_11(%arg0: i32) -> (i32, i32) {
    %c0_i32 = arith.constant 0 : i32
    %c0_i32_0 = arith.constant 0 : i32
    %c0_i32_1 = arith.constant 0 : i32
    return %c0_i32, %c0_i32_0 : i32, i32
  }
  func.func @transform_12(%arg0: i32) -> (i32, i32) {
    %c0_i32 = arith.constant 0 : i32
    %c0_i32_0 = arith.constant 0 : i32
    %c0_i32_1 = arith.constant 0 : i32
    return %c0_i32, %c0_i32_0 : i32, i32
  }
  func.func @transform_13(%arg0: i32) -> (i32, i32) {
    %c0_i32 = arith.constant 0 : i32
    %c0_i32_0 = arith.constant 0 : i32
    %c0_i32_1 = arith.constant 0 : i32
    return %c0_i32, %c0_i32_0 : i32, i32
  }
  func.func @transform_14(%arg0: i32) -> (i32, i32) {
    %c0_i32 = arith.constant 0 : i32
    %c0_i32_0 = arith.constant 0 : i32
    %c0_i32_1 = arith.constant 0 : i32
    return %c0_i32, %c0_i32_0 : i32, i32
  }
  func.func @transform_15(%arg0: i32) -> (i32, i32) {
    %c0_i32 = arith.constant 0 : i32
    %c0_i32_0 = arith.constant 0 : i32
    %c0_i32_1 = arith.constant 0 : i32
    return %c0_i32, %c0_i32_0 : i32, i32
  }
  func.func @transform_16(%arg0: i32) -> (i32, i32) {
    %c0_i32 = arith.constant 0 : i32
    %c0_i32_0 = arith.constant 0 : i32
    return %arg0, %c0_i32 : i32, i32
  }
  func.func @transform_17(%arg0: i32) -> (i32, i32) {
    %c0_i32 = arith.constant 0 : i32
    %c0_i32_0 = arith.constant 0 : i32
    return %arg0, %c0_i32 : i32, i32
  }
}

</mosaic_0001>

<bundles_post_ra>
// kernel: bert_scl_proto_graph_forward.1
= control target key start
LH: loop header
LB: loop body
LE: loop exit
PB: predicated region body
PF: predicated region fallthrough
CT: control target
= control target key end

     0   :  { %s1495_s0 = inlined_call_operand.vmem [shape: bf16[2,32], index: 0, kind: input, shape index: {}]   ;;  %s1496_s1 = inlined_call_operand.vmem [shape: f32[8,4], index: 1, kind: input, shape index: {}]   ;;  %s1497_s2 = inlined_call_operand.vmem [shape: f32[8,1], index: 2, kind: input, shape index: {}]   ;;  %s1498_s3 = inlined_call_operand.vmem [shape: bf16[32,32], index: 3, kind: input, shape index: {}]   ;;  %s1499_s4 = inlined_call_operand.vmem [shape: bf16[32,32], index: 4, kind: input, shape index: {}]   ;;  %s1500_s5 = inlined_call_operand.vmem [shape: bf16[32,32], index: 5, kind: input, shape index: {}]   ;;  %s1501_s6 = inlined_call_operand.vmem [shape: f32[1,32], index: 6, kind: input, shape index: {}, may-alias: {6,10,12}]   ;;  %s1502_s7 = inlined_call_operand.vmem [shape: bf16[32,32], index: 7, kind: input, shape index: {}]   ;;  %s1503_s8 = inlined_call_operand.vmem [shape: bf16[32,4], index: 8, kind: input, shape index: {}]   ;;  %s1504_s9 = inlined_call_operand.vmem [shape: bf16[32,4], index: 9, kind: input, shape index: {}]   ;;  %s1505_s10 = inlined_call_operand.vmem [shape: f32[1,32], index: 10, kind: input, shape index: {}, may-alias: {6,10,12}]   ;;  %s1506_s11 = inlined_call_operand.vmem [shape: bf16[32,32], index: 11, kind: input, shape index: {}]   ;;  %s1507_s12 = inlined_call_operand.vmem [shape: f32[1,32], index: 12, kind: input, shape index: {}, may-alias: {6,10,12}]   ;;  %s1508_s13 = inlined_call_operand.vmem [shape: bf16[32,128], index: 13, kind: input, shape index: {}]   ;;  %s1509_s14 = inlined_call_operand.vmem [shape: bf16[32,128], index: 14, kind: input, shape index: {}]   ;;  %s1510_s15 = inlined_call_operand.vmem [shape: f32[1,128], index: 15, kind: input, shape index: {}]   ;;  %s1511_s16 = inlined_call_operand.hbm [shape: f32[2,128], index: 16, kind: output, shape index: {0}]   ;;  %s1512_s17 = inlined_call_operand.hbm [shape: f32[2,128], index: 17, kind: output, shape index: {1}]  }
   0x1   :  { %1513 = sst [smem:[#allocation8_spill]] %s1495_s0 }
   0x2   :  { %1514 = sst [smem:[#allocation9_spill]] %s1496_s1 }
   0x3   :  { %23 = vsyncpa [#allocation3], 0  ;;  %v1106_v0 = vld [vmem:[%s1500_s5] sm:$0xff]   ;;  %v1192_v1 = vmov 0.0   ;;  %v1107_v2 = vld [vmem:[%s1500_s5 + $0x8] sm:$0xff]   ;;  %vm1193_vm0 = vmmov 0  }
   0x4   :  { %1017 = vmatprep.subr.bf16.mxu0 %v1192_v1  ;;  %1025 = vmatprep.subr.bf16.mxu1 %v1192_v1  ;;  %vm82_vm1 = vcmask 261120   ;;  %s1515_s0 = sld [smem:[#allocation8_spill]] }
   0x5   :  { %1018 = vmatpush3.bf16.msra.mxu0 %v1106_v0  ;;  %1021 = vmatprep.mubr.msk.bf16.mxu0 %vm1193_vm0, %v1192_v1 }
   0x6   :  { %1019 = vmatprep.subr.bf16.mxu0 %v1192_v1  ;;  %1029 = vmatprep.mubr.msk.bf16.mxu1 %vm1193_vm0, %v1192_v1 }
   0x9   :  { %1020 = vmatpush3.bf16.msra.mxu0 %v1107_v2 }
   0xa   :  { %v58_v3 = vld [vmem:[%s1515_s0] sm:$0x1]  ;;  %1033 = vmatprep.subr.bf16.mxu0 %v1192_v1 }
   0xc   :  { %1022 = vmatmul.mubr.msk.bf16.vlgmr.msra.gmra.mrb[0].mxu0 %vm82_vm1, %v58_v3 }
   0xd   :  { %1037 = vmatprep.mubr.msk.bf16.mxu0 %vm1193_vm0, %v1192_v1 }
   0xe   :  { %24 = vsyncpa [#allocation5], 0  ;;  %v1108_v4 = vld [vmem:[%s1502_s7] sm:$0xff]   ;;  %v1109_v5 = vld [vmem:[%s1502_s7 + $0x8] sm:$0xff]   ;;  %v1194_v19 = vmov 0   ;;  %v310_v28 = vlaneseq  ;;  %vm389_vm2 = vcmask 31744  }
   0xf   :  { %1026 = vmatpush3.bf16.msra.mxu1 %v1108_v4  ;;  %v957_v6 = vld [vmem:[%s1501_s6] ss:$0 sm:$0xff]  ;;  %v1112_v16 = vld [vmem:[%s1504_s9 + $0x8] sm:$0xff]   ;;  %1104 = vset.pattern.permute.xlu0 %v1194_v19  ;;  %v1195_v26 = vmov 1966171168   ;;  %s1198_s7 = smov 8  }
  0x10   :  { %1027 = vmatprep.subr.bf16.mxu1 %v1192_v1  ;;  %v1110_v14 = vld [vmem:[%s1504_s9] sm:$0xff]   ;;  %v1113_v17 = vld [vmem:[%s1503_s8 + $0x8] sm:$0xff]   ;;  %1105 = vset.pattern.permute.xlu1 %v1194_v19  ;;  %v308_v27 = vunpack.c.l.s4 %v1195_v26  ;;  %v1367_v30 = vshrl.u32 %v310_v28, 7  ;;  %s1516_s9 = sld [smem:[#allocation9_spill]]  ;;  %s1201_s6 = smov 16   ;;  %vm491_vm5 = vcmask 64512  }
  0x11   :  { %v1111_v15 = vld [vmem:[%s1503_s8] sm:$0xff]   ;;  %s1202_s21 = smov 20   ;;  %s1203_s22 = smov 24   ;;  %vm590_vm6 = vcmask 97280   ;;  %vm592_vm7 = vcmask 130048   ;;  %vm594_vm8 = vcmask 162816  }
  0x12   :  { %1034 = vmatpush3.bf16.msra.mxu0 %v1111_v15  ;;  %v305_v18 = vld [vmem:[%s1497_s2] sm:$0xff]  ;;  %v309_v29 = vunpack.c.0.s8 %v308_v27  ;;  %v1371_v34 = vsub.s32 0, %v1367_v30  ;;  %s1204_s23 = smov 28   ;;  %vm596_vm9 = vcmask 195584   ;;  %vm598_vm10 = vcmask 228352  }
  0x13   :  { %1028 = vmatpush3.bf16.msra.mxu1 %v1109_v5  ;;  %1035 = vmatprep.subr.bf16.mxu0 %v1192_v1  ;;  %vm451_vm11 = vcmask 1041409   ;;  %vm454_vm12 = vcmask 58368  }
  0x14   :  { %1041 = vmatprep.subr.bf16.mxu1 %v1192_v1  ;;  %331 = vperm.xlu0 %1104, %v305_v18   ;;  %v312_v31 = vsub.s32 %v309_v29, %v1367_v30 }
  0x16   :  { %1036 = vmatpush3.bf16.msra.mxu0 %v1113_v17  ;;  %v304_v50 = vld [vmem:[%s1516_s9] sm:$0xff] }
  0x17   :  { %1049 = vmatprep.subr.bf16.mxu0 %v1192_v1 }
  0x93   :  { %v332_v46 = vpop.permute.xlu0 %331 }
  0xdf   :  { %v120_v7 = vpop.f32.mrb[0].mxu0 }
  0xe0   :  { %v121_v8 = vadd.f32 %v957_v6, %v120_v7  ;;  %v1023_v9 = vpop.f32.mrb[1].mxu0 }
  0xe1   :  { %v123_v10 = vpop.f32.mrb[2].mxu0 }
  0xe2   :  { %1124 = vtanh.f32 %v121_v8  ;;  %v1024_v11 = vpop.f32.mrb[3].mxu0 }
  0xec   :  { %v1328_v12 = vpop.eup %1124 }
  0xed   :  { %v1332_v13 = vpack.c.bf16 %v1328_v12, %v1328_v12 }
  0xef   :  { %1030 = vmatmul.mubr.msk.bf16.vlgmr.msra.gmra.mrb[0].mxu1 %vm82_vm1, %v1332_v13 }
  0xf0   :  { %1045 = vmatprep.mubr.msk.bf16.mxu1 %vm1193_vm0, %v1192_v1  ;;  %1042 = vmatpush3.bf16.msra.mxu1 %v1110_v14 }
  0xf1   :  { %1043 = vmatprep.subr.bf16.mxu1 %v1192_v1 }
  0xf4   :  { %1044 = vmatpush3.bf16.msra.mxu1 %v1112_v16 }
  0xf5   :  { %1057 = vmatprep.subr.bf16.mxu1 %v1192_v1 }
 0x1c2   :  { %v1357_v20 = vpop.f32.mrb[0].mxu1 }
 0x1c3   :  { %1126 = vtanh.f32 %v1357_v20  ;;  %v1031_v21 = vpop.f32.mrb[1].mxu1 }
 0x1c4   :  { %v184_v22 = vpop.f32.mrb[2].mxu1 }
 0x1c5   :  { %v1032_v23 = vpop.f32.mrb[3].mxu1 }
 0x1cd   :  { %v1127_v24 = vpop.eup %1126 }
 0x1ce   :  { %v188_v25 = vpack.c.bf16 %v1127_v24, %v1127_v24 }
 0x1d0   :  { %1038 = vmatmul.mubr.msk.bf16.vlgmr.msra.gmra.mrb[4].mxu0 %vm82_vm1, %v188_v25  ;;  %1046 = vmatmul.mubr.msk.bf16.vlgmr.msra.gmra.mrb[4].mxu1 %vm82_vm1, %v188_v25 }
 0x1d1   :  { %1053 = vmatprep.mubr.msk.bf16.mxu0 %vm1193_vm0, %v1192_v1  ;;  %1061 = vmatprep.mubr.msk.bf16.mxu1 %vm1193_vm0, %v1192_v1 }
 0x2a3   :  { %v242_v32 = vpop.f32.mrb[4].mxu0  ;;  %v298_v33 = vpop.f32.mrb[4].mxu1 }
 0x2a4   :  { %v355_v35 = vrot.slane %v242_v32, %v312_v31  ;;  %v313_v36 = vrot.slane %v298_v33, %v312_v31  ;;  %v1039_v37 = vpop.f32.mrb[5].mxu0  ;;  %v1047_v38 = vpop.f32.mrb[5].mxu1 }
 0x2a5   :  { %v245_v39 = vpop.f32.mrb[6].mxu0  ;;  %v301_v40 = vpop.f32.mrb[6].mxu1 }
 0x2a6   :  { %v356_v41 = vcombine.high %v355_v35, %v355_v35  ;;  %v314_v42 = vcombine.high %v313_v36, %v313_v36  ;;  %v321_v43 = vrot.slane %v313_v36, %v312_v31  ;;  %v1040_v44 = vpop.f32.mrb[7].mxu0  ;;  %v1048_v45 = vpop.f32.mrb[7].mxu1  ;;  %v363_v47 = vrot.slane %v355_v35, %v312_v31 }
 0x2a7   :  { %v1197_v45 = vmov 1934713408  }
 0x2a8   :  { %v328_v48 = vrot.slane %v314_v42, %v312_v31  ;;  %v337_v49 = vrot.slane %v321_v43, %v1371_v34  ;;  %v370_v51 = vrot.slane %v356_v41, %v312_v31  ;;  %v374_v54 = vrot.slane %v363_v47, %v1371_v34 }
 0x2a9   :  { %v1196_v42 = vmov 1983009808  }
 0x2aa   :  { %v341_v52 = vrot.slane %v328_v48, %v1371_v34  ;;  %v344_v53 = vmul.f32 %v337_v49, %v332_v46  ;;  %v378_v57 = vrot.slane %v370_v51, %v1371_v34  ;;  %v496_v43 = vunpack.c.l.s4 %v1196_v42 }
 0x2ac   :  { %v345_v55 = vmul.f32 %v341_v52, %v332_v46  ;;  %v346_v56 = vadd.f32 %v344_v53, %v304_v50  ;;  %v497_v44 = vunpack.c.0.s8 %v496_v43  ;;  %v527_v46 = vunpack.c.l.s4 %v1197_v45 }
 0x2ae   :  { %v347_v58 = vadd.f32 %v345_v55, %v304_v50  ;;  %v381_v59 = vadd.f32 %v374_v54, %v346_v56  ;;  %v500_v49 = vsub.s32 %v497_v44, %v1367_v30  ;;  %v528_v50 = vunpack.c.0.s8 %v527_v46  ;;  %v1114_v54 = vld [vmem:[%s1499_s4] sm:$0xff]  }
 0x2af   :  { %v1115_v55 = vld [vmem:[%s1498_s3] sm:$0xff]   ;;  %1050 = vmatpush3.bf16.msra.mxu0 %v1114_v54 }
 0x2b0   :  { %v382_v60 = vadd.f32 %v378_v57, %v347_v58  ;;  %vm383_vm3 = vcmp.gt.f32.partialorder %v381_v59, 0.0  ;;  %v385_v61 = vmul.f32 0.2, %v381_v59  ;;  %v531_v58 = vsub.s32 %v528_v50, %v1367_v30  ;;  %1058 = vmatpush3.bf16.msra.mxu1 %v1115_v55  ;;  %1051 = vmatprep.subr.bf16.mxu0 %v1192_v1 }
 0x2b1   :  { %1059 = vmatprep.subr.bf16.mxu1 %v1192_v1 }
 0x2b2   :  { %vm384_vm4 = vcmp.gt.f32.partialorder %v382_v60, 0.0  ;;  %v386_v62 = vmul.f32 0.2, %v382_v60  ;;  %v387_v63 = vsel %vm383_vm3, %v381_v59, %v385_v61 }
 0x2b3   :  { %v390_v0 = vsel %vm389_vm2, %v387_v63, -inf }
 0x2b4   :  { %v388_v2 = vsel %vm384_vm4, %v382_v60, %v386_v62  ;;  %v391_v3 = vrot.slane %v390_v0, 4 }
 0x2b5   :  { %v397_v4 = vsel %vm389_vm2, %v388_v2, -inf }
 0x2b6   :  { %v392_v5 = vmax.f32 %v390_v0, %v391_v3  ;;  %v398_v6 = vrot.slane %v397_v4, 4  ;;  %v1116_v0 = vld [vmem:[%s1499_s4 + $0x8] sm:$0xff]   ;;  %s1199_s4 = smov 4  }
 0x2b7   :  { %1052 = vmatpush3.bf16.msra.mxu0 %v1116_v0  ;;  %v976_v0 = vld [vmem:[%s1505_s10] ss:$0 sm:$0xff]  ;;  %s1205_s10 = smov [#allocation4]  }
 0x2b8   :  { %v393_v7 = vrot.slane %v392_v5, 2  ;;  %v399_v8 = vmax.f32 %v397_v4, %v398_v6  ;;  %1065 = vmatprep.subr.bf16.mxu0 %v1192_v1 }
 0x2ba   :  { %v394_v9 = vmax.f32 %v392_v5, %v393_v7  ;;  %v400_v10 = vrot.slane %v399_v8, 2 }
 0x2bc   :  { %v395_v11 = vrot.slane %v394_v9, 1  ;;  %v401_v14 = vmax.f32 %v399_v8, %v400_v10 }
 0x2be   :  { %v396_v15 = vmax.f32 %v394_v9, %v395_v11  ;;  %v402_v16 = vrot.slane %v401_v14, 1 }
 0x2c0   :  { %v403_v17 = vmax.f32 %v401_v14, %v402_v16  ;;  %v404_v18 = vsub.f32 %v387_v63, %v396_v15 }
 0x2c2   :  { %v405_v19 = vsub.f32 %v388_v2, %v403_v17  ;;  %v406_v21 = vmul.f32 1.442695, %v404_v18  ;;  %v1117_v2 = vld [vmem:[%s1498_s3 + $0x8] sm:$0xff]   ;;  %s1200_s3 = smov 12  }
 0x2c3   :  { %1060 = vmatpush3.bf16.msra.mxu1 %v1117_v2 }
 0x2c4   :  { %1128 = vpow2.f32 %v406_v21  ;;  %v408_v22 = vmul.f32 1.442695, %v405_v19  ;;  %1073 = vmatprep.subr.bf16.mxu1 %v1192_v1 }
 0x2c6   :  { %1130 = vpow2.f32 %v408_v22 }
 0x2ce   :  { %v1129_v23 = vpop.eup %1128 }
 0x2cf   :  { %v410_v24 = vsel %vm389_vm2, %v1129_v23, 0.0 }
 0x2d0   :  { %v1131_v25 = vpop.eup %1130  ;;  %v411_v26 = vrot.slane %v410_v24, 4 }
 0x2d1   :  { %v417_v27 = vsel %vm389_vm2, %v1131_v25, 0.0 }
 0x2d2   :  { %v412_v29 = vadd.f32 %v411_v26, %v410_v24  ;;  %v418_v31 = vrot.slane %v417_v27, 4 }
 0x2d4   :  { %v419_v32 = vadd.f32 %v418_v31, %v417_v27  ;;  %v413_v33 = vrot.slane %v412_v29, 2 }
 0x2d6   :  { %v414_v35 = vadd.f32 %v413_v33, %v412_v29  ;;  %v420_v36 = vrot.slane %v419_v32, 2 }
 0x2d8   :  { %v415_v37 = vrot.slane %v414_v35, 1  ;;  %v421_v38 = vadd.f32 %v420_v36, %v419_v32 }
 0x2da   :  { %v416_v39 = vadd.f32 %v415_v37, %v414_v35  ;;  %v422_v40 = vrot.slane %v421_v38, 1  ;;  %v1118_v35 = vld [vmem:[%s1506_s11] sm:$0xff]   ;;  %v1119_v37 = vld [vmem:[%s1506_s11 + $0x8] sm:$0xff]  }
 0x2dc   :  { %v423_v41 = vadd.f32 %v422_v40, %v421_v38  ;;  %1132 = vrcp.f32 %v416_v39  ;;  %v1120_v38 = vld [vmem:[%s1508_s13] sm:$0xff]   ;;  %v1121_v39 = vld [vmem:[%s1508_s13 + $0x8] sm:$0xff]  }
 0x2de   :  { %1134 = vrcp.f32 %v423_v41  ;;  %v442_v41 = vand.u32 127, %v310_v28  ;;  %v1122_v28 = vld [vmem:[%s1509_s14] sm:$0xff]  }
 0x2e0   :  { %v1441_v44 = vsub.s32 %v442_v41, %v1367_v30 }
 0x2e6   :  { %v1133_v47 = vpop.eup %1132 }
 0x2e7   :  { %v425_v48 = vmul.f32 %v1133_v47, %v1129_v23 }
 0x2e8   :  { %v1135_v51 = vpop.eup %1134 }
 0x2e9   :  { %v427_v52 = vmul.f32 %v1135_v51, %v1131_v25  ;;  %v494_v53 = vcombine.high %v425_v48, %v1192_v1  ;;  %v501_v56 = vrot.slane %v425_v48, %v500_v49  ;;  %v428_v15 = vsel %vm389_vm2, %v425_v48, 0.0  ;;  %v1123_v51 = vld [vmem:[%s1509_s14 + $0x8] sm:$0xff]  }
 0x2eb   :  { %v516_v57 = vrot.slane %v427_v52, %v500_v49  ;;  %v509_v59 = vcombine.high %v427_v52, %v1192_v1  ;;  %v508_v60 = vrot.slane %v494_v53, %v500_v49  ;;  %v431_v16 = vsel %vm389_vm2, %v427_v52, 0.0 }
 0x2ed   :  { %v525_v61 = vcombine.high %v501_v56, %v516_v57  ;;  %v524_v62 = vcombine.low %v501_v56, %v516_v57  ;;  %v523_v63 = vrot.slane %v509_v59, %v500_v49 }
 0x2ef   :  { %v539_v3 = vrot.slane %v525_v61, %v531_v58  ;;  %v532_v4 = vrot.slane %v524_v62, %v531_v58  ;;  %v540_v5 = vcombine.low %v508_v60, %v523_v63  ;;  %v541_v6 = vcombine.high %v508_v60, %v523_v63 }
 0x2f1   :  { %565 = vrot.lane.b32.xlu1 %v539_v3, %s1198_s7  ;;  %v556_v7 = vcombine.high %v532_v4, %v1192_v1  ;;  %v557_v8 = vcombine.high %v539_v3, %v1192_v1  ;;  %v548_v9 = vrot.slane %v540_v5, %v531_v58  ;;  %v555_v11 = vrot.slane %v541_v6, %v531_v58 }
 0x2f3   :  { %561 = vrot.lane.b32.xlu0 %v556_v7, %s1199_s4  ;;  %v558_v10 = vcombine.high %v548_v9, %v1192_v1  ;;  %v559_v14 = vcombine.high %v555_v11, %v1192_v1 }
 0x2f5   :  { %569 = vrot.lane.b32.xlu1 %v557_v8, %s1200_s3 }
 0x2f7   :  { %573 = vrot.lane.b32.xlu0 %v548_v9, %s1201_s6 }
 0x2f9   :  { %577 = vrot.lane.b32.xlu1 %v558_v10, %s1202_s21 }
 0x2fb   :  { %581 = vrot.lane.b32.xlu0 %v555_v11, %s1203_s22 }
 0x2fd   :  { %585 = vrot.lane.b32.xlu1 %v559_v14, %s1204_s23 }
 0x31a   :  { %429 = vadd.xlane.f32.xlu0 %v428_v15 }
 0x321   :  { %432 = vadd.xlane.f32.xlu1 %v431_v16 }
 0x363   :  { %v566_v17 = vpop.permute.xlu1 %565 }
 0x365   :  { %v562_v18 = vpop.permute.xlu0 %561 }
 0x366   :  { %v588_v19 = vsel %vm389_vm2, %v532_v4, %v562_v18  ;;  %v467_v4 = vsub.s32 1, %v1367_v30 }
 0x367   :  { %v570_v21 = vpop.permute.xlu1 %569  ;;  %v589_v22 = vsel %vm491_vm5, %v588_v19, %v566_v17 }
 0x368   :  { %v591_v23 = vsel %vm590_vm6, %v589_v22, %v570_v21 }
 0x369   :  { %v574_v24 = vpop.permute.xlu0 %573 }
 0x36a   :  { %v593_v25 = vsel %vm592_vm7, %v591_v23, %v574_v24 }
 0x36b   :  { %v578_v26 = vpop.permute.xlu1 %577 }
 0x36c   :  { %v595_v27 = vsel %vm594_vm8, %v593_v25, %v578_v26 }
 0x36d   :  { %v582_v29 = vpop.permute.xlu0 %581 }
 0x36e   :  { %v597_v31 = vsel %vm596_vm9, %v595_v27, %v582_v29 }
 0x36f   :  { %v586_v32 = vpop.permute.xlu1 %585 }
 0x370   :  { %v599_v33 = vsel %vm598_vm10, %v597_v31, %v586_v32 }
 0x371   :  { %v600_v36 = vpack.c.bf16 %v599_v33, %v599_v33 }
 0x373   :  { %1054 = vmatmul.mubr.msk.bf16.vlgmr.msra.gmra.mrb[8].mxu0 %vm82_vm1, %v600_v36  ;;  %1062 = vmatmul.mubr.msk.bf16.vlgmr.msra.gmra.mrb[8].mxu1 %vm82_vm1, %v600_v36 }
 0x374   :  { %1066 = vmatpush3.bf16.msra.mxu0 %v1118_v35  ;;  %1069 = vmatprep.mubr.msk.bf16.mxu0 %vm1193_vm0, %v1192_v1 }
 0x375   :  { %1067 = vmatprep.subr.bf16.mxu0 %v1192_v1  ;;  %1077 = vmatprep.mubr.msk.bf16.mxu1 %vm1193_vm0, %v1192_v1 }
 0x376   :  { %1074 = vmatpush3.bf16.msra.mxu1 %v1122_v28 }
 0x377   :  { %1075 = vmatprep.subr.bf16.mxu1 %v1192_v1 }
 0x378   :  { %1068 = vmatpush3.bf16.msra.mxu0 %v1119_v37 }
 0x379   :  { %1081 = vmatprep.subr.bf16.mxu0 %v1192_v1 }
 0x37a   :  { %1076 = vmatpush3.bf16.msra.mxu1 %v1123_v51 }
 0x37b   :  { %1070 = vmatmul.mubr.msk.bf16.vlgmr.msra.gmra.mrb[12].mxu0 %vm82_vm1, %v1332_v13 }
 0x37c   :  { %1082 = vmatpush3.bf16.msra.mxu0 %v1120_v38  ;;  %1085 = vmatprep.mubr.msk.bf16.mxu0 %vm1193_vm0, %v1192_v1 }
 0x37d   :  { %1083 = vmatprep.subr.bf16.mxu0 %v1192_v1  ;;  %v978_v1 = vld [vmem:[%s1507_s12] ss:$0 sm:$0xff]  ;;  %s945_s12 = sshll.u32 %s1205_s10, 4  ;;  %s946_s12 = int_to_ptr.vmem [resolvable:$true] %s945_s12 }
 0x37e   :  { %s1144_s19 = scalar_lea.vmem %s946_s12, 32  ;;  %p1149_p1 = scmp.lt.s32.totalorder %s946_s12, %s946_s12 }
 0x37f   :  { %p1145_p0 = scmp.ne.s32.totalorder %s946_s12, %s1144_s19  ;;  %p1150_p2 = scmp.lt.s32.totalorder %s1144_s19, %s1144_s19 }
 0x380   :  { %1084 = vmatpush3.bf16.msra.mxu0 %v1121_v39 }
 0x381   :  { %p1151_p3 = por %p1150_p2, %p1149_p1 }
 0x383   :  { %1086 = vmatmul.mubr.msk.bf16.vlgmr.msra.gmra.mrb[16].mxu0 %vm82_vm1, %v1332_v13  ;;  %p1152_p4 = pnand %p1151_p3, %p1145_p0 }
 0x3a7   :  { %v430_v40 = vpop.xlane.xlu0 %429 }
 0x3a8   :  { %v435_v42 = vmul.f32 0.25, %v430_v40 }
 0x3aa   :  { %v437_v45 = vmul.f32 %v435_v42, %v435_v42 }
 0x3ac   :  { %v446_v48 = vrot.slane %v437_v45, %v1441_v44 }
 0x3ae   :  { %v433_v43 = vpop.xlane.xlu1 %432 }
 0x3af   :  { %v436_v46 = vmul.f32 0.25, %v433_v43 }
 0x3b1   :  { %v438_v47 = vmul.f32 %v436_v46, %v436_v46 }
 0x3b3   :  { %v450_v49 = vrot.slane %v438_v47, %v1441_v44 }
 0x3b5   :  { %v452_v50 = vsel %vm451_vm11, %v450_v49, %v446_v48 }
 0x3b6   :  { %v455_v13 = vsel %vm454_vm12, %v452_v50, 0.0 }
 0x3b7   :  { %456 = vadd.xlane.f32.xlu0 %v455_v13 }
 0x444   :  { %v457_v52 = vpop.xlane.xlu0 %456 }
 0x445   :  { %v458_v53 = vmax.f32 %v457_v52, 1e-24 }
 0x446   :  { %v658_v54 = vpop.f32.mrb[8].mxu0  ;;  %v711_v55 = vpop.f32.mrb[8].mxu1 }
 0x447   :  { %1136 = vrsqrt.f32 %v458_v53  ;;  %v664_v56 = vmul.f32 %v658_v54, %v1357_v20  ;;  %v1055_v57 = vpop.f32.mrb[9].mxu0  ;;  %v1063_v58 = vpop.f32.mrb[9].mxu1 }
 0x448   :  { %v661_v59 = vpop.f32.mrb[10].mxu0  ;;  %v714_v60 = vpop.f32.mrb[10].mxu1 }
 0x449   :  { %v712_v61 = vadd.f32 %v711_v55, %v664_v56  ;;  %v1056_v62 = vpop.f32.mrb[11].mxu0  ;;  %v1064_v63 = vpop.f32.mrb[11].mxu1 }
 0x44b   :  { %v724_v2 = vadd.f32 %v976_v0, %v712_v61 }
 0x44d   :  { %v726_v8 = vmin.f32 %v724_v2, 0.0  ;;  %vm725_vm13 = vcmp.gt.f32.partialorder %v724_v2, 0.0 }
 0x44e   :  { %v788_v3 = vpop.f32.mrb[12].mxu0 }
 0x44f   :  { %v789_v20 = vadd.f32 %v978_v1, %v788_v3  ;;  %v1071_v5 = vpop.f32.mrb[13].mxu0  ;;  %v727_v17 = vmul.f32 1.442695, %v726_v8 }
 0x450   :  { %v791_v6 = vpop.f32.mrb[14].mxu0 }
 0x451   :  { %v1137_v7 = vpop.eup %1136  ;;  %v982_v9 = vmul.f32 -1.442695, %v789_v20  ;;  %v1072_v10 = vpop.f32.mrb[15].mxu0 }
 0x452   :  { %v468_v11 = vrot.slane %v1137_v7, %v467_v4  ;;  %v464_v14 = vrot.slane %v1137_v7, %v1371_v34 }
 0x453   :  { %1138 = vpow2.f32 %v982_v9 }
 0x454   :  { %v472_v15 = vmul.f32 %v468_v11, %v436_v46  ;;  %v471_v16 = vmul.f32 %v464_v14, %v435_v42  ;;  %1140 = vpow2.f32 %v727_v17 }
 0x456   :  { %479 = vperm.xlu1 %1105, %v472_v15   ;;  %476 = vperm.xlu0 %1104, %v471_v16   ;;  %v914_v18 = vpop.f32.mrb[16].mxu0 }
 0x457   :  { %v1087_v19 = vpop.f32.mrb[17].mxu0 }
 0x458   :  { %v917_v21 = vpop.f32.mrb[18].mxu0 }
 0x459   :  { %v1088_v30 = vpop.f32.mrb[19].mxu0 }
 0x45d   :  { %v1139_v22 = vpop.eup %1138 }
 0x45e   :  { %v797_v23 = vadd.f32 1.0, %v1139_v22  ;;  %v1141_v24 = vpop.eup %1140 }
 0x45f   :  { %v977_v25 = vadd.f32 -1.0, %v1141_v24 }
 0x460   :  { %1142 = vrcp.f32 %v797_v23 }
 0x461   :  { %v730_v27 = vsel %vm725_vm13, %v724_v2, %v977_v25 }
 0x46a   :  { %v1143_v26 = vpop.eup %1142 }
 0x46b   :  { %v801_v34 = vsub.f32 1.0, %v1143_v26  ;;  %v800_v29 = vmul.f32 %v1143_v26, %v730_v27 }
 0x46d   :  { %v802_v31 = vmul.f32 %v1328_v12, %v801_v34 }
 0x46f   :  { %v803_v32 = vadd.f32 %v802_v31, %v800_v29 }
 0x471   :  { %v808_v33 = vpack.c.bf16 %v803_v32, %v803_v32 }
 0x473   :  { %1078 = vmatmul.mubr.msk.bf16.vlgmr.msra.gmra.mrb[12].mxu1 %vm82_vm1, %v808_v33 }
 0x4d5   :  { %v480_v35 = vpop.permute.xlu1 %479  ;;  %v477_v36 = vpop.permute.xlu0 %476 }
 0x4d6   :  { %v488_v37 = vrot.slane %v480_v35, %v1441_v44  ;;  %v484_v38 = vrot.slane %v477_v36, %v1441_v44 }
 0x4d8   :  { %v489_v39 = vsel %vm451_vm11, %v488_v37, %v484_v38 }
 0x4d9   :  { %v492_v40 = vsel %vm491_vm5, %v489_v39, 0.0 }
 0x4da   :  { %493 = vst [vmem:[#allocation4] sm:$0x3] %v492_v40 }
 0x4db   :  { %1155 = shalt.err (!%p1152_p4)
}
 0x4dc   :  { %s1156_s7 = scalar_lea.hbm %s1512_s17, 32 }
 0x4dd   :  { %p1157_p5 = scmp.ne.s32.totalorder %s1512_s17, %s1156_s7  ;;  %p1160_p6 = scmp.lt.u32.totalorder %s1156_s7, %s1512_s17 }
 0x4df   :  { %p1162_p7 = pnand %p1160_p6, %p1157_p5 }
 0x4e1   :  { %1165 = shalt.err (!%p1162_p7)
}
 0x4e2   :  { %948 = dma.vmem_to_hbm [thread:$0]  %s946_s12, 32, %s1512_s17, [#allocation5]   ;;  %v989_v41 = vld [vmem:[%s1510_s15] ss:$0 sm:$0xff] }
 0x4e3   :  { %s1206_s26 = smov [#allocation2]  }
 0x4e4   :  { %s935_s27 = sshll.u32 %s1206_s26, 4  ;;  %s936_s27 = int_to_ptr.vmem [resolvable:$true] %s935_s27 }
 0x4e5   :  { %s1166_s28 = scalar_lea.vmem %s936_s27, 32  ;;  %p1171_p9 = scmp.lt.s32.totalorder %s936_s27, %s936_s27 }
 0x4e6   :  { %p1167_p8 = scmp.ne.s32.totalorder %s936_s27, %s1166_s28  ;;  %p1172_p10 = scmp.lt.s32.totalorder %s1166_s28, %s1166_s28 }
 0x4e8   :  { %p1173_p11 = por %p1172_p10, %p1171_p9 }
 0x4ea   :  { %p1174_p12 = pnand %p1173_p11, %p1167_p8 }
 0x546   :  { %v862_v12 = vpop.f32.mrb[12].mxu1 }
 0x547   :  { %v915_v42 = vadd.f32 %v914_v18, %v862_v12  ;;  %v1079_v43 = vpop.f32.mrb[13].mxu1 }
 0x548   :  { %v865_v44 = vpop.f32.mrb[14].mxu1 }
 0x549   :  { %v1080_v45 = vpop.f32.mrb[15].mxu1  ;;  %v927_v46 = vadd.f32 %v989_v41, %v915_v42 }
 0x54b   :  { %928 = vst [vmem:[#allocation2] sm:$0x3] %v927_v46 }
 0x54c   :  { %1177 = shalt.err (!%p1174_p12)
}
 0x54d   :  { %s1178_s15 = scalar_lea.hbm %s1511_s16, 32 }
 0x54e   :  { %p1179_p13 = scmp.ne.s32.totalorder %s1511_s16, %s1178_s15  ;;  %p1182_p0 = scmp.lt.u32.totalorder %s1178_s15, %s1511_s16 }
 0x550   :  { %p1184_p1 = pnand %p1182_p0, %p1179_p13 }
 0x552   :  { %1187 = shalt.err (!%p1184_p1)
}
 0x553   :  { %938 = dma.vmem_to_hbm [thread:$0]  %s936_s27, 32, %s1511_s16, [#allocation3]  }
 0x554   :  { %1188 = dma.done.wait [#allocation3], 32  }
 0x555   :  { %1189 = vsyncadd [#allocation3], 4294967264 }
 0x556   :  { %1190 = dma.done.wait [#allocation5], 32  }
 0x557   :  { %1191 = vsyncadd [#allocation5], 4294967264 }
 0x558   :  { %955 = vsyncpa [#allocation3], 1 }
 0x559   :  { %956 = vsyncpa [#allocation5], 1 }

</bundles_post_ra>
